<compile_context>
chip_gen: v6e
topology: v6e:2x2x1
jax: 0.10.0
libtpu: 0.0.40
codegen_flags: <defaults>
</compile_context>

<pallas_src>
import jax
import jax.numpy as jnp
from jax.experimental import pallas as pl
from jax.experimental.pallas import tpu as pltpu


def make_positional_encoding(d_model: int, max_seq_size: int) -> jnp.ndarray:
    """Reproduces the PyTorch __init__ double loop exactly (including the
    asymmetric cosine exponent and the untouched last column for odd d_model)."""
    pos = jnp.arange(max_seq_size, dtype=jnp.float32)[:, None]          # (S, 1)
    i = jnp.arange(d_model // 2, dtype=jnp.float32)[None, :]            # (1, D//2)
    sin_vals = jnp.sin(pos / (10000.0 ** (2.0 * i / d_model)))          # (S, D//2)
    cos_vals = jnp.cos(pos / (10000.0 ** ((2.0 * i + 1.0) / d_model)))  # (S, D//2)
    sin_cols = 2 * jnp.arange(d_model // 2)
    cos_cols = 2 * jnp.arange(d_model // 2) + 1
    pe = jnp.zeros((max_seq_size, d_model), dtype=jnp.float32)
    pe = pe.at[:, sin_cols].set(sin_vals)
    pe = pe.at[:, cos_cols].set(cos_vals)  # odd d_model: last column stays 0
    return pe


def _add_pe_kernel(x_ref, pe_ref, o_ref):
    # x_ref / o_ref: (tR, tC) lane-dense tile; pe_ref: (1, tC) broadcast over rows.
    o_ref[...] = (x_ref[...] + pe_ref[...]).astype(o_ref.dtype)


def _round_up(x: int, m: int) -> int:
    return ((x + m - 1) // m) * m


def _cdiv(a: int, b: int) -> int:
    return -(-a // b)


def _choose_tiles(batch: int, total_cols: int, itemsize: int,
                  target_bytes: int = 2 * 1024 * 1024):
    """Row/col tile sizes whose *sublane-padded* VMEM block stays under
    target_bytes (padded rows = ceil(rows/q)*q, q = 8 f32 / 16 bf16 / 32 int8).
    Pipelined footprint ~ 2 * (x + out + pe) padded blocks <= 6 * target_bytes,
    which fits every generation's scoped VMEM (v5e 16 MiB default is tightest)."""
    q = max(8, 32 // max(1, itemsize))                     # sublane packing quantum
    # Row tile: whole batch, unless even a 128-wide strip would blow the budget
    # (very large B); then tile rows in multiples of q (keeps (8, .) legality).
    tr = batch
    if _round_up(batch, q) * 128 * itemsize > target_bytes:
        tr = min(batch, max(q, (target_bytes // (128 * itemsize)) // q * q))
    padded_rows = _round_up(tr, q)
    # Column tile: largest 128-multiple whose padded block fits the budget.
    # No exact-divisor requirement: grid uses cdiv, ragged last block is clipped.
    tc = max(128, (target_bytes // (padded_rows * itemsize)) // 128 * 128)
    if total_cols >= 256:
        # Guarantee >= 2 column tiles so the "parallel" axis can shard across
        # both v7x TensorCores (engages both cores' DMA queues).
        tc = min(tc, _round_up(_cdiv(total_cols, 2), 128))
    if tc >= total_cols:
        tc = total_cols                                    # single full-width block
    return tr, tc


def position_encoder(x: jnp.ndarray, pe_table: jnp.ndarray) -> jnp.ndarray:
    """Forward pass of PositionEncoder: x + positional_encoding[:, :seq]."""
    B, S, D = x.shape
    # Glue: slice + cast the table to the activation dtype (halves PE traffic for bf16).
    pe = pe_table[:S].astype(x.dtype)                      # (S, D)

    C = S * D
    x2 = x.reshape(B, C)                                   # lane-dense flattened view
    pe2 = pe.reshape(1, C)
    itemsize = jnp.dtype(x.dtype).itemsize

    tR, tC = _choose_tiles(B, C, itemsize)
    n_c = _cdiv(C, tC)                                     # ragged last block allowed
    n_r = _cdiv(B, tR)

    cost = pl.CostEstimate(
        flops=B * C,                                       # one VPU add per element
        transcendentals=0,
        bytes_accessed=(2 * B * C + C) * itemsize,         # read x + write out + read pe once
    )

    out2 = pl.pallas_call(
        _add_pe_kernel,
        out_shape=jax.ShapeDtypeStruct((B, C), x.dtype),
        grid_spec=pltpu.PrefetchScalarGridSpec(
            num_scalar_prefetch=0,
            grid=(n_c, n_r),                               # columns OUTER, rows INNER
            in_specs=[
                pl.BlockSpec((tR, tC), lambda c, r: (r, c)),   # activations
                pl.BlockSpec((1, tC), lambda c, r: (0, c)),    # PE: resident across inner
                                                               # row axis -> fetched once
            ],
            out_specs=pl.BlockSpec((tR, tC), lambda c, r: (r, c)),
        ),
        compiler_params=pltpu.CompilerParams(
            dimension_semantics=("parallel", "arbitrary"), # col axis shards across TCs
            vmem_limit_bytes=48 << 20,                     # headroom; < v7x 64 MiB physical
        ),
        input_output_aliases={0: 0},                       # in-place overwrite of x2
        cost_estimate=cost,
    )(x2, pe2)

    # TODO(synk): biggest remaining win is fusing this add into the adjacent
    # embedding / dropout / layernorm kernel (a standalone pallas_call fences XLA
    # fusion and pays a dedicated read-x + write-out HBM round trip).
    # TODO(synk): for tiny B with huge S, folding a sublane quantum of sequence
    # into the row axis would remove sublane-masked stores; with padded-budget
    # accounting (and PE then needing per-batch refetch) it is a marginal win,
    # so it is intentionally skipped here.
    return out2.reshape(B, S, D)


if __name__ == "__main__":
    d_model = 32
    max_seq_size = 16
    batch = 2
    seq = 8

    pe_table = make_positional_encoding(d_model, max_seq_size)

    key = jax.random.PRNGKey(0)
    x = jax.random.normal(key, (batch, seq, d_model), dtype=jnp.float32)

    # Reference first (pure JAX, same semantics as the PyTorch forward); the
    # kernel aliases/donates its flattened input buffer.
    ref = x + pe_table[None, :seq, :].astype(x.dtype)

    out = jax.jit(position_encoder)(x, pe_table)
    out = jax.block_until_ready(out)

    assert out.shape == (batch, seq, d_model)
    assert jnp.allclose(out, ref, atol=1e-6), "mismatch vs reference"

    print("KERNEL_OK")
</pallas_src>

<mosaic_0001>
module attributes {stable_mosaic.version = 11 : i64} {
  func.func @_add_pe_kernel(%arg0: i32, %arg1: i32, %arg2: memref<2x128xf32, #tpu.memory_space<vmem>>, %arg3: memref<1x128xf32, #tpu.memory_space<vmem>>, %arg4: memref<2x128xf32, #tpu.memory_space<vmem>>) attributes {dimension_semantics = [#tpu.dimension_semantics<parallel>, #tpu.dimension_semantics<arbitrary>], iteration_bounds = array<i64: 2, 1>, scalar_prefetch = 0 : i64, scratch_operands = 0 : i64, tpu.core_type = #tpu.core_type<tc>, window_params = [{transform_indices = @transform_0, window_bounds = array<i64: 2, 128>}, {transform_indices = @transform_1, window_bounds = array<i64: 1, 128>}, {transform_indices = @transform_2, window_bounds = array<i64: 2, 128>}]} {
    %c0 = arith.constant 0 : index
    %c0_0 = arith.constant 0 : index
    %0 = vector.load %arg2[%c0, %c0_0] : memref<2x128xf32, #tpu.memory_space<vmem>>, vector<2x128xf32>
    %c0_1 = arith.constant 0 : index
    %c0_2 = arith.constant 0 : index
    %1 = vector.load %arg3[%c0_1, %c0_2] : memref<1x128xf32, #tpu.memory_space<vmem>>, vector<1x128xf32>
    %2 = vector.broadcast %1 : vector<1x128xf32> to vector<2x128xf32>
    %3 = arith.addf %0, %2 : vector<2x128xf32>
    %c0_3 = arith.constant 0 : index
    %c0_4 = arith.constant 0 : index
    %4 = vector.load %arg4[%c0_3, %c0_4] : memref<2x128xf32, #tpu.memory_space<vmem>>, vector<2x128xf32>
    tpu.vector_store %arg4[%c0_3, %c0_4], %3 {strides = array<i32>} : memref<2x128xf32, #tpu.memory_space<vmem>>, vector<2x128xf32>,
    return
  }
  func.func @transform_0(%arg0: i32, %arg1: i32) -> (i32, i32) {
    %c0_i32 = arith.constant 0 : i32
    return %arg1, %arg0 : i32, i32
  }
  func.func @transform_1(%arg0: i32, %arg1: i32) -> (i32, i32) {
    %c0_i32 = arith.constant 0 : i32
    %c0_i32_0 = arith.constant 0 : i32
    return %c0_i32, %arg0 : i32, i32
  }
  func.func @transform_2(%arg0: i32, %arg1: i32) -> (i32, i32) {
    %c0_i32 = arith.constant 0 : i32
    return %arg1, %arg0 : i32, i32
  }
}

</mosaic_0001>

<bundles_post_ra>
// kernel: position_encoder.1
= control target key start
LH: loop header
LB: loop body
LE: loop exit
PB: predicated region body
PF: predicated region fallthrough
CT: control target
= control target key end

     0   :  { %s364_s9 = smov 0   ;;  %s366_s10 = smov 0   ;;  %s383_s0 = inlined_call_operand.vmem [shape: f32[2,256], index: 0, kind: input, shape index: {}, may-alias: {0,2}]   ;;  %s384_s1 = inlined_call_operand.vmem [shape: f32[1,256], index: 1, kind: input, shape index: {}]   ;;  %s385_s2 = inlined_call_operand.vmem [shape: f32[2,256], index: 2, kind: output, shape index: {}, may-alias: {0,2}]  }
   0x1   :  { %s345_s11 = smov 0  }
   0x2 LB: > { %s24_s12 = sadd.s32 1, %s343_s10  ;;  %p295_p0 = scmp.ge.s32.totalorder %s347_s11, 1  ;;  %s347_s11 = sphi %s345_s11, %s12_s11   ;;  %s343_s10 = sphi %s366_s10, %s387_s10   ;;  %s339_s9 = sphi %s364_s9, %s386_s9  }
   0x3   : > { %p26_p1 = scmp.ge.s32.totalorder %s24_s12, 2  ;;  %p139_p2 = scmp.lt.s32.totalorder %s347_s11, 3 }
   0x5   : > { %s389_s12 = smov (%p26_p1, %s24_s12), 0  ;;  %p140_p3 = pnand %p295_p0, %p139_p2 }
   0x6   : > { %p172_p4 = scmp.lt.s32.totalorder (!%p140_p3), %s339_s9, 1 }
   0x7   : > { %143 = sbr.rel (%p140_p3) target bundleno = 19 (0x13), region = 28 }
   0xc   : > { %s391_s9 = smov (!%p172_p4, %s339_s9), 1 }
   0xd   : > { %s296_s13 = sshll.u32 %s391_s9, 1  ;;  %s180_s16 = scalar_lea.vmem %s384_s1, %s391_s9 }
   0xe   : > { %s177_s19 = scalar_lea.vmem %s383_s0, %s296_s13  ;;  %v298_v0 = vld [vmem:[%s180_s16] ss:$0 sm:$0xff]  ;;  %s188_s22 = scalar_lea.vmem %s385_s2, %s296_s13 }
   0xf   : > { %v189_v1 = vld [vmem:[%s177_s19] sm:$0x3] }
  0x10   : > { %v197_v2 = vadd.f32 %v298_v0, %v189_v1 }
  0x12   : > { %198 = vst [vmem:[%s188_s22] sm:$0x3] %v197_v2 }
  0x13 PF: > { %s12_s11 = sadd.s32 1, %s347_s11   ;;  %s386_s9 = smov %s343_s10 }
  0x14   : > { %p9_p5 = scmp.ge.s32.totalorder %s12_s11, 4   ;;  %s387_s10 = smov %s389_s12 }
  0x16   :  { %11 = sbr.rel (!%p9_p5) target bundleno = 2 (0x2), region = 61 }

</bundles_post_ra>
